<compile_context>
chip_gen: v7x
topology: tpu7x:2x2x1
jax: 0.10.0
libtpu: 0.0.40
codegen_flags: <defaults>
</compile_context>

<pallas_src>
import functools

import jax
import jax.numpy as jnp
from jax.experimental import pallas as pl
from jax.experimental.pallas import tpu as pltpu

_SUB = 8                       # sublane tile
_LANE = 128                    # lane tile
_BLOCK_BYTES = 2 * 1024 * 1024  # HBM bytes per input per grid step (dtype-scaled rows)
_CLAMP = -100.0                # PyTorch clamps each log term at -100


def _bce_kernel(x_ref, t_ref, o_ref, *, rows, block_rows, ragged):
    x = x_ref[...].astype(jnp.float32)
    t = t_ref[...].astype(jnp.float32)

    log_x = jnp.maximum(jnp.log(x), _CLAMP)
    log_1mx = jnp.maximum(jnp.log(1.0 - x), _CLAMP)
    # Negated per-element loss; the final negation is a single scalar op in XLA.
    nloss = log_1mx + t * (log_x - log_1mx)

    def _reduce(v):
        # Vreg-aligned partial reduce: (block_rows, 128) -> (1, 8, 128).
        # The reshape matches vreg boundaries, so this is pure VPU adds.
        return jnp.sum(v.reshape(block_rows // _SUB, _SUB, _LANE), axis=0)[None]

    if ragged:
        i = pl.program_id(0)
        last = pl.num_programs(0) - 1

        @pl.when(i != last)
        def _():
            o_ref[...] = _reduce(nloss)

        @pl.when(i == last)
        def _():
            # Only the final block can contain garbage rows; mask with a
            # single row-iota compare (no 32-bit global-index arithmetic).
            n_valid = rows - i * block_rows
            row = jax.lax.broadcasted_iota(jnp.int32, nloss.shape, 0)
            o_ref[...] = _reduce(jnp.where(row < n_valid, nloss, 0.0))
    else:
        o_ref[...] = _reduce(nloss)


def bce_loss(x, target):
    """Mean binary cross-entropy over all elements (matches nn.BCELoss())."""
    n = x.size
    xf = x.reshape(-1)
    tf = target.reshape(-1)

    rem = n % _LANE
    n_main = n - rem

    # Lane-unaligned tail (<128 elements): plain XLA, no full-array pad/copy.
    tail_sum_neg = jnp.float32(0.0)
    if rem:
        xt = xf[n_main:].astype(jnp.float32)
        tt = tf[n_main:].astype(jnp.float32)
        log_x = jnp.maximum(jnp.log(xt), _CLAMP)
        log_1mx = jnp.maximum(jnp.log(1.0 - xt), _CLAMP)
        tail_sum_neg = jnp.sum(log_1mx + tt * (log_x - log_1mx))

    if n_main == 0:
        return -tail_sum_neg / jnp.float32(n)

    rows = n_main // _LANE
    xm = xf[:n_main].reshape(rows, _LANE)
    tm = tf[:n_main].reshape(rows, _LANE)

    # Dtype-scaled block rows: constant HBM bytes per step (f32: 4096 rows,
    # bf16: 8192 rows).  Cap so num_blocks >= 2 when possible (v7x megacore).
    itemsize = jnp.dtype(x.dtype).itemsize
    base_rows = max(_SUB, (_BLOCK_BYTES // (_LANE * itemsize)) // _SUB * _SUB)
    half_rows = pl.cdiv(pl.cdiv(rows, 2), _SUB) * _SUB
    block_rows = min(base_rows, half_rows)
    num_blocks = pl.cdiv(rows, block_rows)
    ragged = (rows % block_rows) != 0

    partials = pl.pallas_call(
        functools.partial(
            _bce_kernel, rows=rows, block_rows=block_rows, ragged=ragged),
        out_shape=jax.ShapeDtypeStruct((num_blocks, _SUB, _LANE), jnp.float32),
        grid_spec=pltpu.PrefetchScalarGridSpec(
            num_scalar_prefetch=0,
            grid=(num_blocks,),
            in_specs=[
                pl.BlockSpec((block_rows, _LANE), lambda i: (i, 0)),
                pl.BlockSpec((block_rows, _LANE), lambda i: (i, 0)),
            ],
            out_specs=pl.BlockSpec((1, _SUB, _LANE), lambda i: (i, 0, 0)),
        ),
        compiler_params=pltpu.CompilerParams(
            dimension_semantics=("parallel",),
            # 2 inputs x 2 buffers x 2 MiB + f32 intermediates; well under the
            # 64 MiB v7x physical VMEM, above v5e's 16 MiB default scope.
            vmem_limit_bytes=48 * 1024 * 1024,
        ),
    )(xm, tm)

    main_sum_neg = jnp.sum(partials)
    return -(main_sum_neg + tail_sum_neg) / jnp.float32(n)


def _reference_bce(x, target):
    x = x.astype(jnp.float32)
    t = target.astype(jnp.float32)
    log_x = jnp.maximum(jnp.log(x), _CLAMP)
    log_1mx = jnp.maximum(jnp.log(1.0 - x), _CLAMP)
    return jnp.mean(-(t * log_x + (1.0 - t) * log_1mx))


if __name__ == "__main__":
    key = jax.random.PRNGKey(0)
    kx, kt = jax.random.split(key)

    # NCHW input of probabilities in (0, 1), targets in [0, 1].
    shape = (2, 4, 16, 16)
    x = jax.nn.sigmoid(jax.random.normal(kx, shape, dtype=jnp.float32))
    target = jax.random.uniform(kt, shape, dtype=jnp.float32)

    loss = bce_loss(x, target)
    jax.block_until_ready(loss)

    ref = _reference_bce(x, target)
    assert jnp.allclose(loss, ref, rtol=1e-5, atol=1e-5), (loss, ref)

    print("KERNEL_OK")
</pallas_src>

<mosaic_0001>
module attributes {stable_mosaic.version = 11 : i64} {
  func.func @_bce_kernel(%arg0: i32, %arg1: memref<8x128xf32, #tpu.memory_space<vmem>>, %arg2: memref<8x128xf32, #tpu.memory_space<vmem>>, %arg3: memref<1x8x128xf32, #tpu.memory_space<vmem>>) attributes {dimension_semantics = [#tpu.dimension_semantics<parallel>], iteration_bounds = array<i64: 2>, scalar_prefetch = 0 : i64, scratch_operands = 0 : i64, tpu.core_type = #tpu.core_type<tc>, window_params = [{transform_indices = @transform_0, window_bounds = array<i64: 8, 128>}, {transform_indices = @transform_1, window_bounds = array<i64: 8, 128>}, {transform_indices = @transform_2, window_bounds = array<i64: 1, 8, 128>}]} {
    %c0 = arith.constant 0 : index
    %c0_0 = arith.constant 0 : index
    %0 = vector.load %arg1[%c0, %c0_0] : memref<8x128xf32, #tpu.memory_space<vmem>>, vector<8x128xf32>
    %c0_1 = arith.constant 0 : index
    %c0_2 = arith.constant 0 : index
    %1 = vector.load %arg2[%c0_1, %c0_2] : memref<8x128xf32, #tpu.memory_space<vmem>>, vector<8x128xf32>
    %2 = math.log %0 : vector<8x128xf32>
    %cst = arith.constant -1.000000e+02 : f32
    %3 = vector.broadcast %cst : f32 to vector<8x128xf32>
    %4 = arith.maximumf %2, %3 : vector<8x128xf32>
    %cst_3 = arith.constant 1.000000e+00 : f32
    %5 = vector.broadcast %cst_3 : f32 to vector<8x128xf32>
    %6 = arith.subf %5, %0 : vector<8x128xf32>
    %7 = math.log %6 : vector<8x128xf32>
    %cst_4 = arith.constant -1.000000e+02 : f32
    %8 = vector.broadcast %cst_4 : f32 to vector<8x128xf32>
    %9 = arith.maximumf %7, %8 : vector<8x128xf32>
    %10 = arith.subf %4, %9 : vector<8x128xf32>
    %11 = arith.mulf %1, %10 : vector<8x128xf32>
    %12 = arith.addf %9, %11 : vector<8x128xf32>
    %13 = vector.shape_cast %12 : vector<8x128xf32> to vector<1x8x128xf32>
    %cst_5 = arith.constant dense<0.000000e+00> : vector<8x128xf32>
    %14 = vector.multi_reduction <add>, %13, %cst_5 [0] : vector<1x8x128xf32> to vector<8x128xf32>
    %15 = vector.shape_cast %14 : vector<8x128xf32> to vector<1x8x128xf32>
    %c0_6 = arith.constant 0 : index
    %c0_7 = arith.constant 0 : index
    %c0_8 = arith.constant 0 : index
    %16 = vector.load %arg3[%c0_6, %c0_7, %c0_8] : memref<1x8x128xf32, #tpu.memory_space<vmem>>, vector<1x8x128xf32>
    tpu.vector_store %arg3[%c0_6, %c0_7, %c0_8], %15 {strides = array<i32>} : memref<1x8x128xf32, #tpu.memory_space<vmem>>, vector<1x8x128xf32>,
    return
  }
  func.func @transform_0(%arg0: i32) -> (i32, i32) {
    %c0_i32 = arith.constant 0 : i32
    %c0_i32_0 = arith.constant 0 : i32
    return %arg0, %c0_i32 : i32, i32
  }
  func.func @transform_1(%arg0: i32) -> (i32, i32) {
    %c0_i32 = arith.constant 0 : i32
    %c0_i32_0 = arith.constant 0 : i32
    return %arg0, %c0_i32 : i32, i32
  }
  func.func @transform_2(%arg0: i32) -> (i32, i32, i32) {
    %c0_i32 = arith.constant 0 : i32
    %c0_i32_0 = arith.constant 0 : i32
    %c0_i32_1 = arith.constant 0 : i32
    return %arg0, %c0_i32, %c0_i32_0 : i32, i32, i32
  }
}

</mosaic_0001>

<bundles_post_ra>
// kernel: tpu_custom_call.1
= control target key start
LH: loop header
LB: loop body
LE: loop exit
PB: predicated region body
PF: predicated region fallthrough
CT: control target
= control target key end

     0   :  { %7 = vsyncpa [#allocation3], 0  ;;  %s746_s0 = inlined_call_operand.hbm [shape: f32[16,128], index: 0, kind: input, shape index: {}]   ;;  %s747_s1 = inlined_call_operand.hbm [shape: f32[16,128], index: 1, kind: input, shape index: {}]   ;;  %s748_s2 = inlined_call_operand.hbm [shape: f32[2,8,128], index: 2, kind: output, shape index: {}]  }
   0x1   :  { %9 = vsyncpa [#allocation3 + $0x1], 0 }
   0x2   :  { %10 = vsyncpa [#allocation6], 0 }
   0x3   :  { %12 = vsyncpa [#allocation6 + $0x1], 0 }
   0x4   :  { %13 = vsyncpa [#allocation4], 0 }
   0x5   :  { %15 = vsyncpa [#allocation4 + $0x1], 0  ;;  %s537_s9 = smov 0   ;;  %s539_s10 = smov 0  }
   0x6   :  { %s541_s11 = smov 0   ;;  %s543_s12 = smov 0  }
   0x7 LB: > { %s558_s13 = sadd.s32 4294967295, %s517_s12   ;;  %s317_s14 = sadd.s32 4294967294, %s517_s12   ;;  %s517_s12 = sphi %s543_s12, %s767_s12   ;;  %s513_s11 = sphi %s541_s11, %s766_s11   ;;  %s509_s10 = sphi %s539_s10, %s765_s10   ;;  %s505_s9 = sphi %s537_s9, %s764_s9  }
   0x8   : > { %s562_s15 = sadd.s32 1, %s517_s12   ;;  %s28_s16 = sadd.s32 1, %s513_s11 }
   0x9   : > { %s25_s17 = ssub.s32 %s517_s12, %s562_s15  ;;  %p35_p0 = scmp.ne.s32.totalorder %s513_s11, %s509_s10 }
   0xa   : > { %p26_p1 = scmp.eq.s32.totalorder %s25_s17, 0  ;;  %p36_p2 = scmp.eq.s32.totalorder %s517_s12, 0 }
   0xb   : > { %p41_p3 = scmp.ne.s32.totalorder %s509_s10, %s505_s9  ;;  %p42_p4 = scmp.eq.s32.totalorder %s558_s13, 0 }
   0xc   : > { %s574_s18 = scalar_select %p26_p1, %s513_s11, %s28_s16  }
   0xd   : > { %p576_p5 = por %p36_p2, %p35_p0  ;;  %p580_p6 = por %p42_p4, %p41_p3 }
   0xe   : > { %p91_p7 = scmp.eq.s32.totalorder %s558_s13, 1  ;;  %p97_p8 = scmp.eq.s32.totalorder %s317_s14, 1 }
   0xf   : > { %s752_s20 = scalar_select %p580_p6, 1, 0 }
  0x10   : > { %p349_p10 = scmp.lt.s32.totalorder %s517_s12, 2  ;;  %p587_p11 = por %p91_p7, %p35_p0 }
  0x11   : > { %p591_p12 = por %p97_p8, %p41_p3  ;;  %s596_s23 = sand.u32 1, %s513_s11  }
  0x12   : > { %s753_s21 = scalar_select %p587_p11, 1, 0 }
  0x13   : > { %s754_s22 = scalar_select %p591_p12, 1, 0 }
  0x14   : > { %s321_s24 = sshll.u32 %s517_s12, 7  ;;  %s320_s25 = sshll.u32 %s596_s23, 3 }
  0x15   : > { %s605_s28 = scalar_lea.hbm %s746_s0, %s321_s24  ;;  %s121_s29 = scalar_lea.vmem [#allocation2], %s320_s25 }
  0x16   : > { %s128_s30 = sshll.u32 %s121_s29, 4  ;;  %p611_p13 = pnand %p349_p10, %p576_p5  ;;  %s615_s30 = int_to_ptr.vmem [resolvable:$true] %s128_s30 }
  0x17   : > { %s118_s4 = scalar_lea.sflag [#allocation3], %s596_s23  ;;  %s387_s5 = scalar_lea.hbm %s605_s28, 128 }
  0x18   : > { %p388_p2 = scmp.ne.s32.totalorder %s605_s28, %s387_s5  ;;  %p389_p3 = pneg %p611_p13 }
  0x19   : > { %s392_s8 = scalar_lea.hbm %s746_s0, 256  ;;  %p393_p5 = scmp.lt.u32.totalorder %s605_s28, %s746_s0 }
  0x1a   : > { %p390_p4 = pnand %p389_p3, %p388_p2  ;;  %p394_p8 = scmp.lt.u32.totalorder %s392_s8, %s387_s5 }
  0x1b   : > { %p396_p9 = scmp.lt.u32.totalorder %s387_s5, %s605_s28 }
  0x1c   : > { %p391_p7 = pneg %p390_p4  ;;  %p395_p10 = por %p394_p8, %p393_p5 }
  0x1e   : > { %p397_p0 = por %p396_p9, %p395_p10 }
  0x20   : > { %p398_p1 = pnand %p397_p0, %p391_p7 }
  0x22   : > { %401 = shalt.err (!%p398_p1)
}
  0x23   : > { %s402_s17 = scalar_lea.vmem %s615_s30, 128  ;;  %s519_s19 = smov [#allocation2]  }
  0x24   : > { %p403_p2 = scmp.ne.s32.totalorder %s615_s30, %s402_s17  ;;  %s407_s26 = sshll.u32 %s519_s19, 4  ;;  %s408_s26 = int_to_ptr.vmem [resolvable:$false] %s407_s26 }
  0x25   : > { %s409_s27 = scalar_lea.vmem %s408_s26, 256  ;;  %p410_p11 = scmp.lt.s32.totalorder %s615_s30, %s408_s26 }
  0x26   : > { %p405_p4 = pnand %p403_p2, %p389_p3  ;;  %p411_p5 = scmp.lt.s32.totalorder %s409_s27, %s402_s17 }
  0x28   : > { %p406_p12 = pneg %p405_p4  ;;  %p412_p8 = por %p411_p5, %p410_p11 }
  0x2a   : > { %p413_p9 = pnand %p412_p8, %p406_p12 }
  0x2c   : > { %416 = shalt.err (!%p413_p9)
}
  0x2d   : > { %341 = dma.hbm_to_vmem [thread:$0]  (!%p611_p13), %s605_s28, 128, %s615_s30, %s118_s4  }
  0x2e   : > { %p756_p0 = scmp.lt.s32.totalorder %s517_s12, 3  ;;  %p757_p1 = scmp.ge.s32.totalorder %s517_s12, 1 }
  0x2f   : > { %s658_s7 = scalar_lea.hbm %s747_s1, %s321_s24  ;;  %s139_s8 = scalar_lea.vmem [#allocation5], %s320_s25 }
  0x30   : > { %p649_p7 = pnand %p757_p1, %p756_p0  ;;  %s146_s14 = sshll.u32 %s139_s8, 4  ;;  %s147_s14 = int_to_ptr.vmem [resolvable:$true] %s146_s14 }
  0x31   : > { %s136_s28 = scalar_lea.sflag [#allocation6], %s596_s23  ;;  %s417_s30 = scalar_lea.hbm %s658_s7, 128 }
  0x32   : > { %s758_s29 = scalar_select %p649_p7, 1, 0 }
  0x33   : > { %p418_p11 = scmp.ne.s32.totalorder %s658_s7, %s417_s30  ;;  %s422_s24 = scalar_lea.hbm %s747_s1, 256 }
  0x34   : > { %p423_p2 = scmp.lt.u32.totalorder %s658_s7, %s747_s1  ;;  %p424_p4 = scmp.lt.u32.totalorder %s422_s24, %s417_s30 }
  0x35   : > { %p420_p12 = pnand %p418_p11, %p389_p3  ;;  %p426_p8 = scmp.lt.u32.totalorder %s417_s30, %s658_s7 }
  0x36   : > { %p425_p5 = por %p424_p4, %p423_p2 }
  0x37   : > { %p421_p10 = pneg %p420_p12 }
  0x38   : > { %p427_p9 = por %p426_p8, %p425_p5 }
  0x3a   : > { %p428_p0 = pnand %p427_p9, %p421_p10 }
  0x3c   : > { %431 = shalt.err (!%p428_p0)
}
  0x3d   : > { %s432_s23 = scalar_lea.vmem %s147_s14, 128  ;;  %s520_s25 = smov [#allocation5]  }
  0x3e   : > { %p433_p1 = scmp.ne.s32.totalorder %s147_s14, %s432_s23  ;;  %s437_s26 = sshll.u32 %s520_s25, 4  ;;  %s438_s26 = int_to_ptr.vmem [resolvable:$false] %s437_s26 }
  0x3f   : > { %s439_s27 = scalar_lea.vmem %s438_s26, 256  ;;  %p440_p6 = scmp.lt.s32.totalorder %s147_s14, %s438_s26 }
  0x40   : > { %p435_p11 = pnand %p433_p1, %p389_p3  ;;  %p441_p7 = scmp.lt.s32.totalorder %s439_s27, %s432_s23 }
  0x42   : > { %p436_p12 = pneg %p435_p11  ;;  %p442_p2 = por %p441_p7, %p440_p6 }
  0x44   : > { %p443_p4 = pnand %p442_p2, %p436_p12 }
  0x46   : > { %446 = shalt.err (!%p443_p4)
}
  0x47   : > { %344 = dma.hbm_to_vmem [thread:$0]  (!%p611_p13), %s658_s7, 128, %s147_s14, %s136_s28  }
  0x48   : > { %p759_p10 = scmp.ne.s32.totalorder %s758_s29, 0 }
  0x49   : > { %s685_s5 = sand.u32 (!%p759_p10), 1, %s509_s10   ;;  %p760_p3 = scmp.ne.s32.totalorder (!%p759_p10), %s752_s20, 0 }
  0x4a   : > { %155 = sbr.rel (%p759_p10) target bundleno = 122 (0x7a), region = 28  ;;  %s325_s6 = sshll.u32 (!%p759_p10), %s685_s5, 3 }
  0x4b   : > { %s158_s8 = scalar_lea.sflag (!%p759_p10), [#allocation3], %s685_s5  ;;  %s161_s30 = scalar_lea.vmem (!%p759_p10), [#allocation2], %s325_s6 }
  0x51   : > { %492 = dma.done.wait (%p760_p3), %s158_s8, 128  }
  0x52   : > { %494 = vsyncadd (%p760_p3), %s158_s8, 4294967168  ;;  %s167_s3 = scalar_lea.sflag [#allocation6], %s685_s5  ;;  %s170_s7 = scalar_lea.vmem [#allocation5], %s325_s6 }
  0x53   : > { %496 = dma.done.wait (%p760_p3), %s167_s3, 128  }
  0x54   : > { %498 = vsyncadd (%p760_p3), %s167_s3, 4294967168  ;;  %v196_v0 = vld [vmem:[%s161_s30] sm:$0xff]  ;;  %v197_v8 = vld [vmem:[%s170_s7] sm:$0xff]  ;;  %s195_s29 = scalar_lea.vmem [#allocation7], %s325_s6  ;;  %s329_s28 = sshll.u32 %s558_s13, 7 }
  0x55   : > { %383 = vlog2.f32 %v196_v0  ;;  %v201_v1 = vsub.f32 1.0, %v196_v0  ;;  %s224_s14 = sshll.u32 %s195_s29, 4  ;;  %s704_s16 = scalar_lea.hbm %s748_s2, %s329_s28  ;;  %s699_s14 = int_to_ptr.vmem [resolvable:$true] %s224_s14 }
  0x56   : > { %s211_s24 = scalar_lea.sflag [#allocation4], %s685_s5  ;;  %s447_s17 = scalar_lea.vmem %s699_s14, 128 }
  0x57   : > { %385 = vlog2.f32 %v201_v1  ;;  %p448_p6 = scmp.ne.s32.totalorder %s699_s14, %s447_s17  ;;  %p761_p13 = scmp.ne.s32.totalorder %s753_s21, 0 }
  0x58   : > { %s521_s13 = smov [#allocation7]  }
  0x59   : > { %p449_p7 = pnand %p448_p6, %p761_p13  ;;  %s451_s19 = sshll.u32 %s521_s13, 4  ;;  %s452_s19 = int_to_ptr.vmem [resolvable:$false] %s451_s19 }
  0x5a   : > { %s453_s23 = scalar_lea.vmem %s452_s19, 256  ;;  %p454_p8 = scmp.lt.s32.totalorder %s699_s14, %s452_s19 }
  0x5b   : > { %p450_p5 = pneg %p449_p7  ;;  %p455_p9 = scmp.lt.s32.totalorder %s453_s23, %s447_s17 }
  0x5d   : > { %p456_p0 = por %p455_p9, %p454_p8 }
  0x5f   : > { %v384_v2 = vpop.eup %383  ;;  %p457_p1 = pnand %p456_p0, %p450_p5 }
  0x60   : > { %v199_v3 = vmul.f32 0.6931472, %v384_v2 }
  0x61   : > { %v386_v4 = vpop.eup %385 }
  0x62   : > { %v200_v5 = vmax.f32 %v199_v3, -100.0  ;;  %v203_v6 = vmul.f32 0.6931472, %v386_v4 }
  0x64   : > { %v204_v7 = vmax.f32 %v203_v6, -100.0 }
  0x66   : > { %v205_v9 = vsub.f32 %v200_v5, %v204_v7 }
  0x68   : > { %v206_v10 = vmul.f32 %v205_v9, %v197_v8 }
  0x6a   : > { %v207_v11 = vadd.f32 %v206_v10, %v204_v7 }
  0x6c   : > { %209 = vst [vmem:[%s195_s29] sm:$0xff] %v207_v11 }
  0x6d   : > { %460 = shalt.err (!%p457_p1)
}
  0x6e   : > { %s461_s25 = scalar_lea.hbm %s704_s16, 128  ;;  %s465_s5 = scalar_lea.hbm %s748_s2, 256 }
  0x6f   : > { %p462_p11 = scmp.ne.s32.totalorder %s704_s16, %s461_s25  ;;  %p466_p4 = scmp.lt.u32.totalorder %s704_s16, %s748_s2 }
  0x70   : > { %p467_p10 = scmp.lt.u32.totalorder %s465_s5, %s461_s25  ;;  %p469_p6 = scmp.lt.u32.totalorder %s461_s25, %s704_s16 }
  0x71   : > { %p463_p12 = pnand %p462_p11, %p761_p13 }
  0x72   : > { %p468_p3 = por %p467_p10, %p466_p4 }
  0x73   : > { %p464_p2 = pneg %p463_p12 }
  0x74   : > { %p470_p7 = por %p469_p6, %p468_p3 }
  0x76   : > { %p471_p5 = pnand %p470_p7, %p464_p2 }
  0x78   : > { %474 = shalt.err (!%p471_p5)
}
  0x79   : > { %336 = dma.vmem_to_hbm [thread:$0]  (%p761_p13), %s699_s14, 128, %s704_s16, %s211_s24  }
  0x7a PF: > { %s236_s30 = sand.u32 1, %s505_s9   ;;  %p762_p8 = scmp.ne.s32.totalorder %s754_s22, 0 }
  0x7b   : > { %p763_p9 = scmp.ge.s32.totalorder %s517_s12, 2  ;;  %s237_s3 = scalar_lea.sflag [#allocation4], %s236_s30 }
  0x7d   : > { %p346_p0 = pnand %p763_p9, %p762_p8 }
  0x7f   : > { %500 = dma.done.wait (!%p346_p0), %s237_s3, 128  }
  0x80   : > { %502 = vsyncadd (!%p346_p0), %s237_s3, 4294967168  ;;  %p18_p1 = scmp.ge.s32.totalorder %s562_s15, 4   ;;  %s764_s9 = smov %s509_s10 }
  0x81   : > { %s765_s10 = smov %s513_s11  ;;  %s766_s11 = smov %s574_s18 }
  0x82   : > { %s767_s12 = smov %s562_s15  ;;  %20 = sbr.rel (!%p18_p1) target bundleno = 7 (0x7), region = 86 }
  0x89   :  { %242 = vsyncpa [#allocation3], 1 }
  0x8a   :  { %244 = vsyncpa [#allocation3 + $0x1], 1 }
  0x8b   :  { %245 = vsyncpa [#allocation6], 1 }
  0x8c   :  { %247 = vsyncpa [#allocation6 + $0x1], 1 }
  0x8d   :  { %248 = vsyncpa [#allocation4], 1 }
  0x8e   :  { %250 = vsyncpa [#allocation4 + $0x1], 1 }

</bundles_post_ra>
